<compile_context>
chip_gen: v6e
topology: v6e:2x2x1
jax: 0.10.0
libtpu: 0.0.40
codegen_flags: <defaults>
</compile_context>

<pallas_src>
import functools

import jax
import jax.numpy as jnp
from jax.experimental import pallas as pl
from jax.experimental.pallas import tpu as pltpu


def _round_up(v: int, m: int) -> int:
    return (v + m - 1) // m * m


def _choose_batch_tiling(batch: int, batch_tile: int):
    """Pick (tile, padded_batch).  Balances rows across grid steps, keeps the
    tile a multiple of 16 (bf16 sublane packing), and forces >=2 grid steps for
    batch >= 32 so v7x's two TensorCores both get work."""
    n_steps = pl.cdiv(batch, batch_tile)
    if batch >= 32:
        n_steps = max(n_steps, 2)
    tb = _round_up(pl.cdiv(batch, n_steps), 16)
    b_pad = _round_up(batch, tb)
    return tb, b_pad


def mlp_kernel(x_ref, w1_ref, b1_ref, w2_ref, b2_ref, w3_ref, b3_ref, out_ref):
    # f32 -> bf16 cast fused in-kernel (free under MXU/DMA slack); avoids a
    # separate XLA cast op and an extra HBM round trip of x.
    x = x_ref[...].astype(w1_ref.dtype)
    # layer 1: (TB, S)bf16 @ (S, H)bf16 -> f32 acc, bias + ReLU in f32
    h1 = jnp.dot(x, w1_ref[...], preferred_element_type=jnp.float32)
    h1 = jnp.maximum(h1 + b1_ref[...], 0.0)
    # layer 2: (TB, H) @ (H, H) -> f32 acc, bias + ReLU in f32
    h2 = jnp.dot(h1.astype(w2_ref.dtype), w2_ref[...],
                 preferred_element_type=jnp.float32)
    h2 = jnp.maximum(h2 + b2_ref[...], 0.0)
    # layer 3: (TB, H) @ (H, A_pad) -> f32 Q-values (lane-dense, no activation)
    q = jnp.dot(h2.astype(w3_ref.dtype), w3_ref[...],
                preferred_element_type=jnp.float32)
    out_ref[...] = (q + b3_ref[...]).astype(out_ref.dtype)


def dqn_net_forward(x, params, n_actions, *, batch_tile=1024):
    """x: (batch, n_states) f32. params: dict with bf16 weights (in,out) layout,
    f32 biases, and w3/b3 zero-padded to a multiple of 128 output lanes.
    Returns (batch, n_actions) f32 Q-values."""
    w1, b1, w2, b2, w3, b3 = (params[k] for k in ("w1", "b1", "w2", "b2", "w3", "b3"))

    batch, n_states = x.shape
    hidden = w1.shape[1]
    a_pad = w3.shape[1]

    tb, b_pad = _choose_batch_tiling(batch, batch_tile)
    if b_pad != batch:
        # Padded rows compute garbage Q-values; they are sliced off below.
        x = jnp.pad(x, ((0, b_pad - batch), (0, 0)))

    # Weights/biases: constant index_map (VMEM-resident across grid steps) and
    # single-buffered — the second pipeline buffer would never be used.
    def resident(shape):
        return pl.BlockSpec(shape, lambda i: (0, 0), pipeline_mode=pl.Buffered(1))

    out = pl.pallas_call(
        mlp_kernel,
        out_shape=jax.ShapeDtypeStruct((b_pad, a_pad), jnp.float32),
        grid=(b_pad // tb,),
        in_specs=[
            pl.BlockSpec((tb, n_states), lambda i: (i, 0)),  # x: blocked over batch
            resident((n_states, hidden)),                    # w1
            resident((1, hidden)),                           # b1
            resident((hidden, hidden)),                      # w2
            resident((1, hidden)),                           # b2
            resident((hidden, a_pad)),                       # w3 (lane-padded)
            resident((1, a_pad)),                            # b3
        ],
        out_specs=pl.BlockSpec((tb, a_pad), lambda i: (i, 0)),
        compiler_params=pltpu.CompilerParams(dimension_semantics=("parallel",)),
    )(x, w1, b1, w2, b2, w3, b3)

    return out[:batch, :n_actions]


def init_params(key, n_states, n_actions, hidden_dim=128):
    """torch.nn.Linear-style init: U[-1/sqrt(fan_in), 1/sqrt(fan_in)].
    Weights stored (in_features, out_features) in bf16, biases (1, out) in f32.
    Layer-3 weight/bias are zero-padded to a multiple of 128 output lanes."""
    ks = jax.random.split(key, 6)

    def lin(kw, kb, fan_in, fan_out):
        bound = 1.0 / jnp.sqrt(jnp.float32(fan_in))
        w = jax.random.uniform(kw, (fan_in, fan_out), jnp.float32, -bound, bound)
        b = jax.random.uniform(kb, (1, fan_out), jnp.float32, -bound, bound)
        return w, b

    w1, b1 = lin(ks[0], ks[1], n_states, hidden_dim)
    w2, b2 = lin(ks[2], ks[3], hidden_dim, hidden_dim)
    w3, b3 = lin(ks[4], ks[5], hidden_dim, n_actions)

    # Lane-pad layer 3 to 128-wide output (zero columns -> exact semantics after slice).
    a_pad = _round_up(max(n_actions, 1), 128)
    w3 = jnp.pad(w3, ((0, 0), (0, a_pad - n_actions)))
    b3 = jnp.pad(b3, ((0, 0), (0, a_pad - n_actions)))

    return dict(
        w1=w1.astype(jnp.bfloat16), b1=b1,
        w2=w2.astype(jnp.bfloat16), b2=b2,
        w3=w3.astype(jnp.bfloat16), b3=b3,
    )


if __name__ == "__main__":
    key = jax.random.PRNGKey(0)
    k_x, k_p = jax.random.split(key)

    batch, n_states, n_actions, hidden_dim = 32, 4, 2, 128

    x = jax.random.normal(k_x, (batch, n_states), jnp.float32)
    params = init_params(k_p, n_states, n_actions, hidden_dim)

    fwd = functools.partial(dqn_net_forward, n_actions=n_actions)
    q = jax.block_until_ready(fwd(x, params))
    assert q.shape == (batch, n_actions)

    # Reference in plain JAX using the same bf16-quantized operands, f32 math.
    xf = x.astype(jnp.bfloat16).astype(jnp.float32)
    w1f = params["w1"].astype(jnp.float32)
    w2f = params["w2"].astype(jnp.float32)
    w3f = params["w3"].astype(jnp.float32)[:, :n_actions]
    b3f = params["b3"][:, :n_actions]
    h1 = jnp.maximum(xf @ w1f + params["b1"], 0.0)
    h2 = jnp.maximum(h1.astype(jnp.bfloat16).astype(jnp.float32) @ w2f + params["b2"], 0.0)
    q_ref = h2.astype(jnp.bfloat16).astype(jnp.float32) @ w3f + b3f

    assert jnp.allclose(q, q_ref, atol=1e-2, rtol=1e-2), (
        f"max abs err = {jnp.max(jnp.abs(q - q_ref))}")

    print("KERNEL_OK")
</pallas_src>

<mosaic_0001>
module attributes {stable_mosaic.version = 11 : i64} {
  func.func @mlp_kernel(%arg0: i32, %arg1: memref<16x4xf32, #tpu.memory_space<vmem>>, %arg2: memref<4x128xbf16, #tpu.memory_space<vmem>>, %arg3: memref<1x128xf32, #tpu.memory_space<vmem>>, %arg4: memref<128x128xbf16, #tpu.memory_space<vmem>>, %arg5: memref<1x128xf32, #tpu.memory_space<vmem>>, %arg6: memref<128x128xbf16, #tpu.memory_space<vmem>>, %arg7: memref<1x128xf32, #tpu.memory_space<vmem>>, %arg8: memref<16x128xf32, #tpu.memory_space<vmem>>) attributes {dimension_semantics = [#tpu.dimension_semantics<parallel>], iteration_bounds = array<i64: 2>, scalar_prefetch = 0 : i64, scratch_operands = 0 : i64, tpu.core_type = #tpu.core_type<tc>, window_params = [{transform_indices = @transform_0, window_bounds = array<i64: 16, 4>}, {pipeline_mode = #tpu.pipeline_mode<synchronous>, transform_indices = @transform_1, window_bounds = array<i64: 4, 128>}, {pipeline_mode = #tpu.pipeline_mode<synchronous>, transform_indices = @transform_2, window_bounds = array<i64: 1, 128>}, {pipeline_mode = #tpu.pipeline_mode<synchronous>, transform_indices = @transform_3, window_bounds = array<i64: 128, 128>}, {pipeline_mode = #tpu.pipeline_mode<synchronous>, transform_indices = @transform_4, window_bounds = array<i64: 1, 128>}, {pipeline_mode = #tpu.pipeline_mode<synchronous>, transform_indices = @transform_5, window_bounds = array<i64: 128, 128>}, {pipeline_mode = #tpu.pipeline_mode<synchronous>, transform_indices = @transform_6, window_bounds = array<i64: 1, 128>}, {transform_indices = @transform_7, window_bounds = array<i64: 16, 128>}]} {
    %c0 = arith.constant 0 : index
    %c0_0 = arith.constant 0 : index
    %0 = vector.load %arg1[%c0, %c0_0] : memref<16x4xf32, #tpu.memory_space<vmem>>, vector<16x4xf32>
    %1 = arith.truncf %0 : vector<16x4xf32> to vector<16x4xbf16>
    %c0_1 = arith.constant 0 : index
    %c0_2 = arith.constant 0 : index
    %2 = vector.load %arg2[%c0_1, %c0_2] : memref<4x128xbf16, #tpu.memory_space<vmem>>, vector<4x128xbf16>
    %cst = arith.constant dense<0.000000e+00> : vector<16x128xf32>
    %3 = tpu.matmul %1, %2, %cst {dimension_numbers = #tpu.dot_dimension_numbers<[1], [0], [0], [1], [0, 0, 1, 1], [], []>} : vector<16x4xbf16>, vector<4x128xbf16>, vector<16x128xf32> -> vector<16x128xf32>
    %c0_3 = arith.constant 0 : index
    %c0_4 = arith.constant 0 : index
    %4 = vector.load %arg3[%c0_3, %c0_4] : memref<1x128xf32, #tpu.memory_space<vmem>>, vector<1x128xf32>
    %5 = vector.broadcast %4 : vector<1x128xf32> to vector<16x128xf32>
    %6 = arith.addf %3, %5 : vector<16x128xf32>
    %cst_5 = arith.constant 0.000000e+00 : f32
    %7 = vector.broadcast %cst_5 : f32 to vector<16x128xf32>
    %8 = arith.maximumf %6, %7 : vector<16x128xf32>
    %9 = arith.truncf %8 : vector<16x128xf32> to vector<16x128xbf16>
    %c0_6 = arith.constant 0 : index
    %c0_7 = arith.constant 0 : index
    %10 = vector.load %arg4[%c0_6, %c0_7] : memref<128x128xbf16, #tpu.memory_space<vmem>>, vector<128x128xbf16>
    %cst_8 = arith.constant dense<0.000000e+00> : vector<16x128xf32>
    %11 = tpu.matmul %9, %10, %cst_8 {dimension_numbers = #tpu.dot_dimension_numbers<[1], [0], [0], [1], [0, 0, 1, 1], [], []>} : vector<16x128xbf16>, vector<128x128xbf16>, vector<16x128xf32> -> vector<16x128xf32>
    %c0_9 = arith.constant 0 : index
    %c0_10 = arith.constant 0 : index
    %12 = vector.load %arg5[%c0_9, %c0_10] : memref<1x128xf32, #tpu.memory_space<vmem>>, vector<1x128xf32>
    %13 = vector.broadcast %12 : vector<1x128xf32> to vector<16x128xf32>
    %14 = arith.addf %11, %13 : vector<16x128xf32>
    %cst_11 = arith.constant 0.000000e+00 : f32
    %15 = vector.broadcast %cst_11 : f32 to vector<16x128xf32>
    %16 = arith.maximumf %14, %15 : vector<16x128xf32>
    %17 = arith.truncf %16 : vector<16x128xf32> to vector<16x128xbf16>
    %c0_12 = arith.constant 0 : index
    %c0_13 = arith.constant 0 : index
    %18 = vector.load %arg6[%c0_12, %c0_13] : memref<128x128xbf16, #tpu.memory_space<vmem>>, vector<128x128xbf16>
    %cst_14 = arith.constant dense<0.000000e+00> : vector<16x128xf32>
    %19 = tpu.matmul %17, %18, %cst_14 {dimension_numbers = #tpu.dot_dimension_numbers<[1], [0], [0], [1], [0, 0, 1, 1], [], []>} : vector<16x128xbf16>, vector<128x128xbf16>, vector<16x128xf32> -> vector<16x128xf32>
    %c0_15 = arith.constant 0 : index
    %c0_16 = arith.constant 0 : index
    %20 = vector.load %arg7[%c0_15, %c0_16] : memref<1x128xf32, #tpu.memory_space<vmem>>, vector<1x128xf32>
    %21 = vector.broadcast %20 : vector<1x128xf32> to vector<16x128xf32>
    %22 = arith.addf %19, %21 : vector<16x128xf32>
    %c0_17 = arith.constant 0 : index
    %c0_18 = arith.constant 0 : index
    %23 = vector.load %arg8[%c0_17, %c0_18] : memref<16x128xf32, #tpu.memory_space<vmem>>, vector<16x128xf32>
    tpu.vector_store %arg8[%c0_17, %c0_18], %22 {strides = array<i32>} : memref<16x128xf32, #tpu.memory_space<vmem>>, vector<16x128xf32>,
    return
  }
  func.func @transform_0(%arg0: i32) -> (i32, i32) {
    %c0_i32 = arith.constant 0 : i32
    %c0_i32_0 = arith.constant 0 : i32
    return %arg0, %c0_i32 : i32, i32
  }
  func.func @transform_1(%arg0: i32) -> (i32, i32) {
    %c0_i32 = arith.constant 0 : i32
    %c0_i32_0 = arith.constant 0 : i32
    %c0_i32_1 = arith.constant 0 : i32
    return %c0_i32, %c0_i32_0 : i32, i32
  }
  func.func @transform_2(%arg0: i32) -> (i32, i32) {
    %c0_i32 = arith.constant 0 : i32
    %c0_i32_0 = arith.constant 0 : i32
    %c0_i32_1 = arith.constant 0 : i32
    return %c0_i32, %c0_i32_0 : i32, i32
  }
  func.func @transform_3(%arg0: i32) -> (i32, i32) {
    %c0_i32 = arith.constant 0 : i32
    %c0_i32_0 = arith.constant 0 : i32
    %c0_i32_1 = arith.constant 0 : i32
    return %c0_i32, %c0_i32_0 : i32, i32
  }
  func.func @transform_4(%arg0: i32) -> (i32, i32) {
    %c0_i32 = arith.constant 0 : i32
    %c0_i32_0 = arith.constant 0 : i32
    %c0_i32_1 = arith.constant 0 : i32
    return %c0_i32, %c0_i32_0 : i32, i32
  }
  func.func @transform_5(%arg0: i32) -> (i32, i32) {
    %c0_i32 = arith.constant 0 : i32
    %c0_i32_0 = arith.constant 0 : i32
    %c0_i32_1 = arith.constant 0 : i32
    return %c0_i32, %c0_i32_0 : i32, i32
  }
  func.func @transform_6(%arg0: i32) -> (i32, i32) {
    %c0_i32 = arith.constant 0 : i32
    %c0_i32_0 = arith.constant 0 : i32
    %c0_i32_1 = arith.constant 0 : i32
    return %c0_i32, %c0_i32_0 : i32, i32
  }
  func.func @transform_7(%arg0: i32) -> (i32, i32) {
    %c0_i32 = arith.constant 0 : i32
    %c0_i32_0 = arith.constant 0 : i32
    return %arg0, %c0_i32 : i32, i32
  }
}

</mosaic_0001>

<bundles_post_ra>
// kernel: tpu_custom_call.1
= control target key start
LH: loop header
LB: loop body
LE: loop exit
PB: predicated region body
PF: predicated region fallthrough
CT: control target
= control target key end

     0   :  { %12 = vsyncpa [#allocation3], 0  ;;  %s1234_s0 = inlined_call_operand.vmem [shape: f32[32,4], index: 0, kind: input, shape index: {}]   ;;  %s1235_s1 = inlined_call_operand.vmem [shape: bf16[4,128], index: 1, kind: input, shape index: {}]   ;;  %s1236_s2 = inlined_call_operand.vmem [shape: f32[1,128], index: 2, kind: input, shape index: {}]   ;;  %s1237_s3 = inlined_call_operand.hbm [shape: bf16[128,128], index: 3, kind: input, shape index: {}]   ;;  %s1238_s4 = inlined_call_operand.vmem [shape: f32[1,128], index: 4, kind: input, shape index: {}]   ;;  %s1239_s5 = inlined_call_operand.hbm [shape: bf16[128,128], index: 5, kind: input, shape index: {}]   ;;  %s1240_s6 = inlined_call_operand.vmem [shape: f32[1,128], index: 6, kind: input, shape index: {}]   ;;  %s1241_s7 = inlined_call_operand.hbm [shape: f32[32,128], index: 7, kind: output, shape index: {}]  }
   0x1   :  { %13 = vsyncpa [#allocation6], 0 }
   0x2   :  { %14 = vsyncpa [#allocation4], 0 }
   0x3   :  { %16 = vsyncpa [#allocation4 + $0x1], 0  ;;  %s1057_s24 = smov 0   ;;  %s1059_s25 = smov 0  }
   0x4   :  { %s1061_s26 = smov 0   ;;  %s1063_s27 = smov 0  }
   0x5 LB: > { %s1078_s28 = sadd.s32 4294967295, %s1006_s27   ;;  %s701_s29 = sadd.s32 4294967294, %s1006_s27   ;;  %s1006_s27 = sphi %s1063_s27, %s1255_s27   ;;  %s1002_s26 = sphi %s1061_s26, %s1254_s26   ;;  %s998_s25 = sphi %s1059_s25, %s1253_s25   ;;  %s994_s24 = sphi %s1057_s24, %s1252_s24  }
   0x6   : > { %s1082_s30 = sadd.s32 1, %s1006_s27   ;;  %s181_s8 = sadd.s32 1, %s1002_s26 }
   0x7   : > { %s178_s9 = ssub.s32 %s1006_s27, %s1082_s30  ;;  %p191_p0 = scmp.ne.s32.totalorder %s1002_s26, %s998_s25 }
   0x8   : > { %p179_p1 = scmp.eq.s32.totalorder %s178_s9, 0  ;;  %p192_p2 = scmp.eq.s32.totalorder %s1078_s28, 1 }
   0x9   : > { %p197_p3 = scmp.ne.s32.totalorder %s998_s25, %s994_s24  ;;  %p198_p4 = scmp.eq.s32.totalorder %s701_s29, 1 }
   0xa   : > { %s1093_s10 = scalar_select %p179_p1, %s1002_s26, %s181_s8  }
   0xb   : > { %p1095_p5 = por %p192_p2, %p191_p0  ;;  %p1099_p6 = por %p198_p4, %p197_p3 }
   0xc   : > { %p702_p7 = scmp.ge.s32.totalorder %s1006_s27, 1  ;;  %p205_p8 = scmp.lt.s32.totalorder %s1006_s27, 3 }
   0xd   : > { %s1244_s12 = scalar_select %p1099_p6, 1, 0 }
   0xe   : > { %p1242_p9 = scmp.eq.s32.totalorder %s1078_s28, 0  ;;  %p1106_p10 = pnand %p702_p7, %p205_p8 }
   0xf   : > { %s1008_s14 = smov [#allocation2]   ;;  %s1009_s17 = smov [#allocation5]  }
  0x10   : > { %s223_s15 = sshll.u32 %s1008_s14, 4  ;;  %p814_p11 = pneg %p1106_p10  ;;  %s224_s15 = int_to_ptr.vmem [resolvable:$true] %s223_s15 }
  0x11   : > { %s239_s18 = sshll.u32 %s1009_s17, 4  ;;  %s897_s19 = scalar_lea.vmem %s224_s15, 1024  ;;  %s240_s18 = int_to_ptr.vmem [resolvable:$true] %s239_s18 }
  0x12   : > { %p1114_p12 = pnand %p1242_p9, %p814_p11  ;;  %p898_p0 = scmp.ne.s32.totalorder %s224_s15, %s897_s19 }
  0x13   : > { %p905_p3 = scmp.lt.s32.totalorder %s224_s15, %s224_s15  ;;  %p906_p4 = scmp.lt.s32.totalorder %s897_s19, %s897_s19 }
  0x14   : > { %p888_p13 = pneg %p1114_p12 }
  0x15   : > { %p907_p7 = por %p906_p4, %p905_p3 }
  0x16   : > { %p900_p1 = pnand %p898_p0, %p888_p13 }
  0x18   : > { %p901_p2 = pneg %p900_p1 }
  0x1a   : > { %p908_p8 = pnand %p907_p7, %p901_p2 }
  0x1c   : > { %911 = shalt.err (!%p908_p8)
}
  0x1d   : > { %s1010_s20 = smov 64   ;;  %s1011_s21 = smov 4  }
  0x1e   : > { %817 = dma.hbm_to_vmem [thread:$0]  (!%p1114_p12), %s1237_s3, 1024, %s224_s15, [#allocation3], %s1010_s20, %s1010_s20, %s1011_s21  }
  0x1f   : > { %s923_s29 = scalar_lea.vmem %s240_s18, 1024  ;;  %p931_p9 = scmp.lt.s32.totalorder %s240_s18, %s240_s18 }
  0x20   : > { %p924_p11 = scmp.ne.s32.totalorder %s240_s18, %s923_s29  ;;  %p932_p6 = scmp.lt.s32.totalorder %s923_s29, %s923_s29 }
  0x22   : > { %p926_p0 = pnand %p924_p11, %p888_p13  ;;  %p933_p3 = por %p932_p6, %p931_p9 }
  0x24   : > { %p927_p1 = pneg %p926_p0 }
  0x26   : > { %p934_p2 = pnand %p933_p3, %p927_p1 }
  0x28   : > { %937 = shalt.err (!%p934_p2)
}
  0x29   : > { %820 = dma.hbm_to_vmem [thread:$0]  (!%p1114_p12), %s1239_s5, 1024, %s240_s18, [#allocation6], %s1010_s20, %s1010_s20, %s1011_s21  }
  0x2a   : > { %267 = sbr.rel (%p1106_p10) target bundleno = 679 (0x2a7), region = 48  ;;  %p1247_p4 = scmp.eq.s32.totalorder (!%p1106_p10), %s1078_s28, 0 }
  0x2f   : > { %981 = dma.done.wait (%p1247_p4), [#allocation3], 1024   ;;  %p1248_p13 = pmov %p1247_p4 }
  0x30   : > { %p1249_p7 = pmov %p1247_p4 }
  0x31   : > { %983 = vsyncadd (%p1248_p13), [#allocation3], 4294966272 }
  0x32   : > { %985 = dma.done.wait (%p1249_p7), [#allocation6], 1024   ;;  %p1250_p6 = pmov %p1247_p4 }
  0x33   : > { %s710_s14 = sshll.u32 %s1078_s28, 1  ;;  %v1012_v0 = vmov 0.0   ;;  %vm1013_vm0 = vmmov 0   ;;  %vm326_vm1 = vcmask 1041408   ;;  %v314_v1 = vld [vmem:[%s1235_s1] sm:$0x3] }
  0x34   : > { %987 = vsyncadd (%p1250_p6), [#allocation6], 4294966272  ;;  %758 = vmatprep.subr.bf16.mxu0 %v1012_v0  ;;  %760 = vmatprep.mubr.msk.bf16.mxu0 %vm1013_vm0, %v1012_v0  ;;  %p304_p9 = scmp.lt.s32.totalorder %s710_s14, 3  ;;  %v328_v4 = vsel %vm326_vm1, %v314_v1, 0  ;;  %v870_v6 = vld [vmem:[#allocation2 + $0x38] sm:$0xff]   ;;  %vm322_vm2 = vcmask 31744  }
  0x35   : > { %764 = vmatprep.subr.bf16.mxu1 %v1012_v0  ;;  %780 = vmatprep.mubr.msk.bf16.mxu1 %vm1013_vm0, %v1012_v0  ;;  %v871_v7 = vld [vmem:[#allocation2 + $0x30] sm:$0xff]   ;;  %v872_v8 = vld [vmem:[#allocation2 + $0x28] sm:$0xff]   ;;  %v873_v9 = vld [vmem:[#allocation2 + $0x20] sm:$0xff]   ;;  %s300_s29 = sand.u32 1, %s998_s25   ;;  %s737_s16 = sshll.u32 %s1078_s28, 8 }
  0x36   : > { %s1257_s14 = smov (!%p304_p9, %s710_s14), 3  ;;  %759 = vmatpush3.bf16.msra.mxu0 %v328_v4  ;;  %765 = vmatpush3.bf16.msra.mxu1 %v870_v6  ;;  %v874_v10 = vld [vmem:[#allocation2 + $0x18] sm:$0xff]   ;;  %v875_v11 = vld [vmem:[#allocation2 + $0x10] sm:$0xff]   ;;  %v876_v12 = vld [vmem:[#allocation2 + $0x8] sm:$0xff]   ;;  %s709_s8 = sshll.u32 %s300_s29, 4 }
  0x37   : > { %s711_s13 = sshll.u32 %s1257_s14, 3  ;;  %784 = vmatprep.subr.bf16.mxu0 %v1012_v0  ;;  %766 = vmatprep.subr.bf16.mxu1 %v1012_v0  ;;  %v877_v13 = vld [vmem:[#allocation2] sm:$0xff]   ;;  %v878_v14 = vld [vmem:[#allocation5 + $0x38] sm:$0xff]   ;;  %v879_v15 = vld [vmem:[#allocation5 + $0x30] sm:$0xff]   ;;  %s1192_s19 = scalar_lea.hbm %s1241_s7, %s737_s16 }
  0x38   : > { %s307_s17 = scalar_lea.vmem %s1234_s0, %s711_s13  ;;  %v880_v16 = vld [vmem:[#allocation5 + $0x28] sm:$0xff]   ;;  %v881_v17 = vld [vmem:[#allocation5 + $0x20] sm:$0xff]   ;;  %v882_v18 = vld [vmem:[#allocation5 + $0x18] sm:$0xff]   ;;  %s302_s13 = scalar_lea.vmem [#allocation7], %s709_s8 }
  0x39   : > { %v311_v2 = vld [vmem:[%s307_s17] sm:$0xff]  ;;  %v312_v3 = vld [vmem:[%s307_s17 + $0x8] sm:$0xff]  ;;  %v883_v29 = vld [vmem:[#allocation5 + $0x10] sm:$0xff]   ;;  %s617_s15 = sshll.u32 %s302_s13, 4  ;;  %s1194_s20 = scalar_lea.sflag [#allocation4], %s300_s29  ;;  %s1187_s15 = int_to_ptr.vmem [resolvable:$true] %s617_s15 }
  0x3a   : > { %v313_v5 = vpack.c.bf16 %v312_v3, %v311_v2  ;;  %767 = vmatpush3.bf16.msra.mxu1 %v871_v7  ;;  %v712_v19 = vld [vmem:[%s1236_s2] ss:$0 sm:$0xff]  ;;  %v884_v30 = vld [vmem:[#allocation5 + $0x8] sm:$0xff]   ;;  %s938_s21 = scalar_lea.vmem %s1187_s15, 256  ;;  %s1014_s28 = smov [#allocation7]  }
  0x3b   : > { %768 = vmatprep.subr.bf16.mxu1 %v1012_v0  ;;  %v885_v31 = vld [vmem:[#allocation5] sm:$0xff]   ;;  %p939_p10 = scmp.ne.s32.totalorder %s1187_s15, %s938_s21  ;;  %s942_s22 = sshll.u32 %s1014_s28, 4  ;;  %s943_s22 = int_to_ptr.vmem [resolvable:$false] %s942_s22 }
  0x3c   : > { %761 = vmatmul.mubr.msk.bf16.vlgmr.msra.gmra.mxu0 %vm322_vm2, %v313_v5  ;;  %v714_v32 = vld [vmem:[%s1238_s4] ss:$0 sm:$0xff]  ;;  %s944_s23 = scalar_lea.vmem %s943_s22, 512  ;;  %p945_p11 = scmp.lt.s32.totalorder %s1187_s15, %s943_s22 }
  0x3d   : > { %800 = vmatprep.mubr.msk.bf16.mxu0 %vm1013_vm0, %v1012_v0  ;;  %785 = vmatpush3.bf16.msra.mxu0 %v878_v14  ;;  %v723_v42 = vld [vmem:[%s1240_s6] ss:$0 sm:$0xff]  ;;  %p940_p12 = pnand %p939_p10, %p1095_p5  ;;  %p946_p0 = scmp.lt.s32.totalorder %s944_s23, %s938_s21 }
  0x3e   : > { %769 = vmatpush3.bf16.msra.mxu1 %v872_v8  ;;  %786 = vmatprep.subr.bf16.mxu0 %v1012_v0 }
  0x3f   : > { %770 = vmatprep.subr.bf16.mxu1 %v1012_v0  ;;  %p941_p8 = pneg %p940_p12  ;;  %p947_p1 = por %p946_p0, %p945_p11 }
  0x41   : > { %787 = vmatpush3.bf16.msra.mxu0 %v879_v15  ;;  %p948_p3 = pnand %p947_p1, %p941_p8 }
  0x42   : > { %771 = vmatpush3.bf16.msra.mxu1 %v873_v9  ;;  %788 = vmatprep.subr.bf16.mxu0 %v1012_v0 }
  0x43   : > { %772 = vmatprep.subr.bf16.mxu1 %v1012_v0 }
  0x45   : > { %789 = vmatpush3.bf16.msra.mxu0 %v880_v16 }
  0x46   : > { %773 = vmatpush3.bf16.msra.mxu1 %v874_v10  ;;  %790 = vmatprep.subr.bf16.mxu0 %v1012_v0 }
  0x47   : > { %774 = vmatprep.subr.bf16.mxu1 %v1012_v0 }
  0x49   : > { %791 = vmatpush3.bf16.msra.mxu0 %v881_v17 }
  0x4a   : > { %775 = vmatpush3.bf16.msra.mxu1 %v875_v11  ;;  %792 = vmatprep.subr.bf16.mxu0 %v1012_v0 }
  0x4b   : > { %776 = vmatprep.subr.bf16.mxu1 %v1012_v0 }
  0x4d   : > { %793 = vmatpush3.bf16.msra.mxu0 %v882_v18 }
  0x4e   : > { %777 = vmatpush3.bf16.msra.mxu1 %v876_v12  ;;  %794 = vmatprep.subr.bf16.mxu0 %v1012_v0 }
  0x4f   : > { %778 = vmatprep.subr.bf16.mxu1 %v1012_v0 }
  0x51   : > { %795 = vmatpush3.bf16.msra.mxu0 %v883_v29 }
  0x52   : > { %779 = vmatpush3.bf16.msra.mxu1 %v877_v13  ;;  %796 = vmatprep.subr.bf16.mxu0 %v1012_v0 }
  0x55   : > { %797 = vmatpush3.bf16.msra.mxu0 %v884_v30 }
  0x56   : > { %798 = vmatprep.subr.bf16.mxu0 %v1012_v0 }
  0x59   : > { %799 = vmatpush3.bf16.msra.mxu0 %v885_v31 }
  0xfc   : > { %v364_v20 = vpop.f32.mrf.mxu0 }
  0xfd   : > { %v365_v22 = vadd.f32 %v712_v19, %v364_v20 }
  0xfe   : > { %v762_v21 = vpop.f32.mrf.mxu0 }
  0xff   : > { %v371_v26 = vmax.f32 %v365_v22, 0.0 }
 0x100   : > { %v367_v23 = vpop.f32.mrf.mxu0 }
 0x101   : > { %v368_v24 = vadd.f32 %v712_v19, %v367_v23 }
 0x102   : > { %v763_v25 = vpop.f32.mrf.mxu0 }
 0x103   : > { %v372_v27 = vmax.f32 %v368_v24, 0.0 }
 0x105   : > { %v373_v28 = vpack.c.bf16 %v372_v27, %v371_v26 }
 0x107   : > { %781 = vmatmul.mubr.bf16.vlgmr.msra.gmra.mxu1 %v373_v28 }
 0x1c7   : > { %v479_v33 = vpop.f32.mrf.mxu1 }
 0x1c8   : > { %v480_v35 = vadd.f32 %v714_v32, %v479_v33 }
 0x1c9   : > { %v782_v34 = vpop.f32.mrf.mxu1 }
 0x1ca   : > { %v486_v39 = vmax.f32 %v480_v35, 0.0 }
 0x1cb   : > { %v482_v36 = vpop.f32.mrf.mxu1 }
 0x1cc   : > { %v483_v37 = vadd.f32 %v714_v32, %v482_v36 }
 0x1cd   : > { %v783_v38 = vpop.f32.mrf.mxu1 }
 0x1ce   : > { %v487_v40 = vmax.f32 %v483_v37, 0.0 }
 0x1d0   : > { %v488_v41 = vpack.c.bf16 %v487_v40, %v486_v39 }
 0x1d2   : > { %801 = vmatmul.mubr.bf16.vlgmr.msra.gmra.mxu0 %v488_v41 }
 0x292   : > { %v594_v43 = vpop.f32.mrf.mxu0 }
 0x293   : > { %v595_v44 = vadd.f32 %v723_v42, %v594_v43 }
 0x294   : > { %v802_v45 = vpop.f32.mrf.mxu0 }
 0x295   : > { %601 = vst [vmem:[%s302_s13] sm:$0xff] %v595_v44 }
 0x296   : > { %v597_v46 = vpop.f32.mrf.mxu0 }
 0x297   : > { %v598_v47 = vadd.f32 %v723_v42, %v597_v46 }
 0x298   : > { %v803_v48 = vpop.f32.mrf.mxu0 }
 0x299   : > { %602 = vst [vmem:[%s302_s13 + $0x8] sm:$0xff] %v598_v47 }
 0x29a   : > { %951 = shalt.err (!%p948_p3)
}
 0x29b   : > { %s952_s29 = scalar_lea.hbm %s1192_s19, 256  ;;  %s956_s14 = scalar_lea.hbm %s1241_s7, 512 }
 0x29c   : > { %p953_p2 = scmp.ne.s32.totalorder %s1192_s19, %s952_s29  ;;  %p957_p7 = scmp.lt.s32.totalorder %s1192_s19, %s1241_s7 }
 0x29d   : > { %p958_p6 = scmp.lt.s32.totalorder %s956_s14, %s952_s29 }
 0x29e   : > { %p954_p4 = pnand %p953_p2, %p1095_p5 }
 0x29f   : > { %p959_p9 = por %p958_p6, %p957_p7 }
 0x2a0   : > { %p955_p13 = pneg %p954_p4 }
 0x2a2   : > { %p960_p10 = pnand %p959_p9, %p955_p13 }
 0x2a4   : > { %963 = shalt.err (!%p960_p10)
}
 0x2a5   : > { %s1015_s17 = smov 128   ;;  %s1016_s18 = smov 8  }
 0x2a6   : > { %812 = dma.vmem_to_hbm [thread:$0]  (%p1095_p5), %s1187_s15, 256, %s1192_s19, %s1194_s20, %s1015_s17, %s1015_s17, %s1016_s18  }
 0x2a7 PF: > { %p829_p12 = scmp.ge.s32.totalorder %s1006_s27, 2  ;;  %s632_s21 = sand.u32 1, %s994_s24  }
 0x2a8   : > { %p1251_p8 = scmp.ne.s32.totalorder %s1244_s12, 0  ;;  %s633_s28 = scalar_lea.sflag [#allocation4], %s632_s21 }
 0x2aa   : > { %p822_p11 = pnand %p829_p12, %p1251_p8 }
 0x2ac   : > { %p823_p0 = pneg %p822_p11 }
 0x2ae   : > { %989 = dma.done.wait (%p823_p0), %s633_s28, 256  }
 0x2af   : > { %991 = vsyncadd (%p823_p0), %s633_s28, 4294967040  ;;  %p19_p1 = scmp.ge.s32.totalorder %s1082_s30, 4   ;;  %s1252_s24 = smov %s998_s25 }
 0x2b0   : > { %s1253_s25 = smov %s1002_s26  ;;  %s1254_s26 = smov %s1093_s10 }
 0x2b1   : > { %s1255_s27 = smov %s1082_s30  ;;  %21 = sbr.rel (!%p19_p1) target bundleno = 5 (0x5), region = 92 }
 0x2b6   :  { %638 = vsyncpa [#allocation3], 1 }
 0x2b7   :  { %640 = vsyncpa [#allocation3 + $0x1], 1 }
 0x2b8   :  { %641 = vsyncpa [#allocation6], 1 }
 0x2b9   :  { %642 = vsyncpa [#allocation4], 1 }
 0x2ba   :  { %644 = vsyncpa [#allocation4 + $0x1], 1 }

</bundles_post_ra>
